<compile_context>
chip_gen: v5e
topology: v5e:2x2
jax: 0.10.0
libtpu: 0.0.40
codegen_flags: <defaults>
</compile_context>

<pallas_src>
import functools

import numpy as np

import jax
import jax.numpy as jnp
from jax import lax
from jax.experimental import pallas as pl
from jax.experimental.pallas import tpu as pltpu


_TEN_OVER_LN10 = 10.0 / float(np.log(10.0))


def _snr_loss_kernel(x_ref, t_ref, basis_ref, out_ref, *,
                     f_pad, n_freq, min_idx, max_idx, inv_df, block_b, n_valid):
    f32 = jnp.float32
    i32 = jnp.int32

    # --- One-sided real-DFT power spectrum: one bf16 MXU matmul ([cos | sin]) ---
    xb = x_ref[...].astype(jnp.bfloat16)                              # (block_b, N)
    xc = jnp.dot(xb, basis_ref[...], preferred_element_type=f32)      # (block_b, 2*f_pad)
    xr = xc[:, :f_pad]
    xi = xc[:, f_pad:]
    p1 = xr * xr + xi * xi                                            # (block_b, f_pad)

    # --- Closed-form reference bin (matches torch argmin's first-minimum tie-break) ---
    t = t_ref[...].astype(f32)                                        # (block_b, 1)
    ri = jnp.ceil(t * f32(inv_df) - f32(0.5)).astype(i32)
    ri = jnp.clip(ri, 0, n_freq - 1)                                  # (block_b, 1) int32
    ri_m1 = jnp.where(ri > 0, ri - 1, n_freq - 1)                     # torch u[-1] wrap
    ri_p1 = ri + 1
    ri2 = 2 * ri
    # NOTE: torch raises IndexError if 2*ref_idx >= n_freq; here that harmonic bin
    # falls on zero-padded spectrum columns and simply contributes nothing.

    # --- Signal / noise templates: int32 compares, single fused band mask ---
    kk = lax.broadcasted_iota(i32, p1.shape, 1)                       # (block_b, f_pad)
    half = (kk == ri_m1) | (kk == ri_p1)      # torch assigns the 0.5's last -> they win
    ones = (kk == ri) | (kk == ri2)
    u = jnp.where(half, f32(0.5), jnp.where(ones, f32(1.0), f32(0.0)))
    w_keep = (kk >= min_idx) & (kk < max_idx) & (kk != ri2 - 1) & (kk != ri2 + 1)
    w = jnp.where(w_keep, f32(1.0) - u, f32(0.0))

    sig = jnp.sum(p1 * u, axis=-1, keepdims=True)                     # (block_b, 1)
    noi = jnp.sum(p1 * w, axis=-1, keepdims=True)
    loss = -f32(_TEN_OVER_LN10) * jnp.log(sig / (noi + f32(1.0)))

    # Mask zero-padded batch rows, reduce to a per-tile partial sum (lane-dense store).
    row = pl.program_id(0) * block_b + lax.broadcasted_iota(i32, (block_b, 1), 0)
    loss = jnp.where(row < n_valid, loss, f32(0.0))
    tile_sum = jnp.sum(loss, axis=0, keepdims=True)                   # (1, 1)
    out_ref[...] = jnp.broadcast_to(tile_sum, out_ref.shape)          # (1, 8, 128)


def snr_loss(outputs: jax.Array, targets: jax.Array, Fs: float = 20, *,
             block_b: int | None = None) -> jax.Array:
    """Pallas TPU implementation of _SNRLoss.forward."""
    outputs = jnp.asarray(outputs)
    targets = jnp.asarray(targets)
    n = outputs.shape[-1]
    outputs = outputs.reshape(-1, n)
    targets = targets.reshape(-1, 1).astype(jnp.float32)
    b = outputs.shape[0]

    # Static (trace-time) frequency-grid constants.
    n_freq = n // 2 + 1
    f = np.linspace(0.0, float(Fs) / 2.0, n_freq)
    pulse_band = np.array([40.0 / 60.0, 250.0 / 60.0])
    min_idx = int(np.argmin(np.abs(f - pulse_band[0])))
    max_idx = int(np.argmin(np.abs(f - pulse_band[1])))
    df = (float(Fs) / 2.0) / float(n_freq - 1)
    inv_df = 1.0 / df

    # Only bins k < 2*max_idx + 2 can ever receive signal/noise weight for targets
    # inside the pulse band (physiological rates) -> trim the DFT to those bins.
    n_used = min(n_freq, 2 * max_idx + 2)
    f_pad = max(128, ((n_used + 127) // 128) * 128)

    # Concatenated real-DFT bases [cos | sin] (rfft, normalized=True -> 1/sqrt(N)),
    # zero-padded to a lane multiple, bf16 for the MXU (accumulation stays f32).
    n_idx = np.arange(n, dtype=np.float64)[:, None]
    k_idx = np.arange(f_pad, dtype=np.float64)[None, :]
    ang = 2.0 * np.pi * n_idx * k_idx / float(n)
    scale = 1.0 / np.sqrt(float(n))
    cos_m = np.cos(ang) * scale
    sin_m = -np.sin(ang) * scale
    cos_m[:, n_used:] = 0.0
    sin_m[:, n_used:] = 0.0
    basis = jnp.asarray(np.concatenate([cos_m, sin_m], axis=1), dtype=jnp.bfloat16)

    # --- Generation-aware VMEM budget & batch tile size ---
    try:
        vmem_cap = int(pltpu.get_tpu_info().vmem_capacity_bytes)
    except Exception:
        vmem_cap = 64 * 1024 * 1024  # conservative (v7x per-TC) fallback

    basis_vmem = 2 * (n * 2 * f_pad * 2)          # double-buffered bf16 basis
    x_bytes = outputs.dtype.itemsize
    # Per batch row: double-buffered input tile + bf16 MXU copy + ~f32 temporaries
    # (xc, xr, xi, p1, u, w, masks) that the compiler materializes.
    per_row = 2 * n * x_bytes + n * 2 + 2 * (2 * f_pad) * 4 + 8 * f_pad * 4
    if block_b is None:
        budget = int(0.45 * vmem_cap) - basis_vmem
        block_b = max(64, min(512, budget // max(per_row, 1)))
    block_b = int(min(block_b, max(8, ((b + 7) // 8) * 8)))
    block_b = max(8, (block_b // 8) * 8)

    num_tiles = -(-b // block_b)
    b_pad = num_tiles * block_b
    if b_pad != b:
        outputs = jnp.pad(outputs, ((0, b_pad - b), (0, 0)))
        targets = jnp.pad(targets, ((0, b_pad - b), (0, 0)))

    est_vmem = (basis_vmem + block_b * per_row
                + 2 * block_b * 128 * 4            # targets tile (lane-padded), x2
                + 2 * 8 * 128 * 4)                 # output block, x2
    vmem_limit = int(min(int(0.9 * vmem_cap),
                         max(32 * 1024 * 1024, 2 * est_vmem)))

    kernel = functools.partial(
        _snr_loss_kernel, f_pad=f_pad, n_freq=n_freq, min_idx=min_idx,
        max_idx=max_idx, inv_df=inv_df, block_b=block_b, n_valid=b)

    partial_sums = pl.pallas_call(
        kernel,
        out_shape=jax.ShapeDtypeStruct((num_tiles, 8, 128), jnp.float32),
        grid_spec=pltpu.PrefetchScalarGridSpec(
            num_scalar_prefetch=0,
            grid=(num_tiles,),
            in_specs=[
                pl.BlockSpec((block_b, n), lambda i: (i, 0)),        # signal tile
                pl.BlockSpec((block_b, 1), lambda i: (i, 0)),        # reference rates
                pl.BlockSpec((n, 2 * f_pad), lambda i: (0, 0)),      # [cos|sin] basis (grid-invariant)
            ],
            out_specs=pl.BlockSpec((1, 8, 128), lambda i: (i, 0, 0)),
        ),
        compiler_params=pltpu.CompilerParams(
            dimension_semantics=("parallel",),   # independent batch tiles (dual-TC on v7x)
            vmem_limit_bytes=vmem_limit,
        ),
    )(outputs, targets, basis)

    return jnp.sum(partial_sums[:, 0, 0]) / jnp.float32(b)


def _reference_snr_loss(outputs, targets, Fs=20):
    """NumPy port of the PyTorch _SNRLoss.forward (float64)."""
    outputs = np.asarray(outputs, dtype=np.float64).reshape(-1, outputs.shape[-1])
    targets = np.asarray(targets, dtype=np.float64).reshape(-1)
    n = outputs.shape[-1]
    n_freq = n // 2 + 1
    f = np.linspace(0.0, float(Fs) / 2.0, n_freq)
    pulse_band = [40.0 / 60.0, 250.0 / 60.0]
    min_idx = int(np.argmin(np.abs(f - pulse_band[0])))
    max_idx = int(np.argmin(np.abs(f - pulse_band[1])))
    X = np.fft.rfft(outputs, axis=-1) / np.sqrt(n)   # normalized=True
    P1 = X.real ** 2 + X.imag ** 2
    losses = []
    for count, ref in enumerate(targets):
        ref_idx = int(np.argmin(np.abs(f - ref)))
        u = np.zeros(n_freq)
        u[ref_idx] = u[ref_idx * 2] = 1.0
        u[ref_idx - 1] = u[ref_idx + 1] = 0.5
        w = 1.0 - u
        w[0:min_idx] = 0.0
        w[max_idx:] = 0.0
        w[ref_idx * 2 - 1] = w[ref_idx * 2 + 1] = 0.0
        sig = float(np.sum(P1[count] * u))
        noi = float(np.sum(P1[count] * w))
        losses.append(-10.0 * np.log10(sig / (noi + 1.0)))
    return float(np.mean(losses))


if __name__ == "__main__":
    key = jax.random.PRNGKey(0)
    k1, k2 = jax.random.split(key)

    batch, n = 4, 256          # (batch_size, signal_length), Fs = 20 Hz
    outputs = jax.random.normal(k1, (batch, n), dtype=jnp.float32)
    # Reference rates (Hz) inside the pulse band [40/60, 250/60].
    targets = jax.random.uniform(k2, (batch, 1), dtype=jnp.float32,
                                 minval=1.0, maxval=3.5)

    loss = jax.block_until_ready(snr_loss(outputs, targets, Fs=20))
    ref = _reference_snr_loss(np.asarray(outputs), np.asarray(targets), Fs=20)

    assert np.isfinite(float(loss)), float(loss)
    # bf16 MXU operands (f32 accumulation) trade a little DFT precision for ~3-6x
    # MXU throughput; observed error is well inside 1e-2 rel/abs on this workload.
    assert np.allclose(float(loss), ref, rtol=1e-2, atol=1e-2), (float(loss), ref)
    print("KERNEL_OK")
</pallas_src>

<mosaic_0001>
module attributes {stable_mosaic.version = 11 : i64} {
  func.func @_snr_loss_kernel(%arg0: i32, %arg1: memref<8x256xf32, #tpu.memory_space<vmem>>, %arg2: memref<8x1xf32, #tpu.memory_space<vmem>>, %arg3: memref<256x256xbf16, #tpu.memory_space<vmem>>, %arg4: memref<1x8x128xf32, #tpu.memory_space<vmem>>) attributes {dimension_semantics = [#tpu.dimension_semantics<parallel>], iteration_bounds = array<i64: 1>, scalar_prefetch = 0 : i64, scratch_operands = 0 : i64, tpu.core_type = #tpu.core_type<tc>, window_params = [{transform_indices = @transform_0, window_bounds = array<i64: 8, 256>}, {transform_indices = @transform_1, window_bounds = array<i64: 8, 1>}, {pipeline_mode = #tpu.pipeline_mode<synchronous>, transform_indices = @transform_2, window_bounds = array<i64: 256, 256>}, {transform_indices = @transform_3, window_bounds = array<i64: 1, 8, 128>}]} {
    %c0 = arith.constant 0 : index
    %c0_0 = arith.constant 0 : index
    %0 = vector.load %arg1[%c0, %c0_0] : memref<8x256xf32, #tpu.memory_space<vmem>>, vector<8x256xf32>
    %1 = arith.truncf %0 : vector<8x256xf32> to vector<8x256xbf16>
    %c0_1 = arith.constant 0 : index
    %c0_2 = arith.constant 0 : index
    %2 = vector.load %arg3[%c0_1, %c0_2] : memref<256x256xbf16, #tpu.memory_space<vmem>>, vector<256x256xbf16>
    %cst = arith.constant dense<0.000000e+00> : vector<8x256xf32>
    %3 = tpu.matmul %1, %2, %cst {dimension_numbers = #tpu.dot_dimension_numbers<[1], [0], [0], [1], [0, 0, 1, 1], [], []>} : vector<8x256xbf16>, vector<256x256xbf16>, vector<8x256xf32> -> vector<8x256xf32>
    %4 = vector.extract_strided_slice %3 {offsets = [0, 0], sizes = [8, 128], strides = [1, 1]} : vector<8x256xf32> to vector<8x128xf32>
    %5 = vector.extract_strided_slice %3 {offsets = [0, 128], sizes = [8, 128], strides = [1, 1]} : vector<8x256xf32> to vector<8x128xf32>
    %6 = arith.mulf %4, %4 : vector<8x128xf32>
    %7 = arith.mulf %5, %5 : vector<8x128xf32>
    %8 = arith.addf %6, %7 : vector<8x128xf32>
    %c0_3 = arith.constant 0 : index
    %c0_4 = arith.constant 0 : index
    %9 = vector.load %arg2[%c0_3, %c0_4] : memref<8x1xf32, #tpu.memory_space<vmem>>, vector<8x1xf32>
    %cst_5 = arith.constant 1.280000e+01 : f32
    %10 = vector.broadcast %cst_5 : f32 to vector<8x1xf32>
    %11 = arith.mulf %9, %10 : vector<8x1xf32>
    %cst_6 = arith.constant 5.000000e-01 : f32
    %12 = vector.broadcast %cst_6 : f32 to vector<8x1xf32>
    %13 = arith.subf %11, %12 : vector<8x1xf32>
    %14 = math.ceil %13 : vector<8x1xf32>
    %15 = arith.fptosi %14 : vector<8x1xf32> to vector<8x1xi32>
    %c0_i32 = arith.constant 0 : i32
    %c128_i32 = arith.constant 128 : i32
    %16 = vector.broadcast %c0_i32 : i32 to vector<8x1xi32>
    %17 = arith.maxsi %16, %15 : vector<8x1xi32>
    %18 = vector.broadcast %c128_i32 : i32 to vector<8x1xi32>
    %19 = arith.minsi %18, %17 : vector<8x1xi32>
    %c0_i32_7 = arith.constant 0 : i32
    %20 = vector.broadcast %c0_i32_7 : i32 to vector<8x1xi32>
    %21 = arith.cmpi sgt, %19, %20 : vector<8x1xi32>
    %c1_i32 = arith.constant 1 : i32
    %22 = vector.broadcast %c1_i32 : i32 to vector<8x1xi32>
    %23 = arith.subi %19, %22 : vector<8x1xi32>
    %c128_i32_8 = arith.constant 128 : i32
    %24 = vector.broadcast %c128_i32_8 : i32 to vector<8x1xi32>
    %25 = arith.select %21, %23, %24 : vector<8x1xi1>, vector<8x1xi32>
    %c1_i32_9 = arith.constant 1 : i32
    %26 = vector.broadcast %c1_i32_9 : i32 to vector<8x1xi32>
    %27 = arith.addi %19, %26 : vector<8x1xi32>
    %c2_i32 = arith.constant 2 : i32
    %28 = vector.broadcast %c2_i32 : i32 to vector<8x1xi32>
    %29 = arith.muli %28, %19 : vector<8x1xi32>
    %30 = tpu.iota {dimensions = array<i32: 1>} : vector<8x128xi32>
    %31 = vector.broadcast %25 : vector<8x1xi32> to vector<8x128xi32>
    %32 = arith.cmpi eq, %30, %31 : vector<8x128xi32>
    %33 = vector.broadcast %27 : vector<8x1xi32> to vector<8x128xi32>
    %34 = arith.cmpi eq, %30, %33 : vector<8x128xi32>
    %35 = arith.ori %32, %34 : vector<8x128xi1>
    %36 = vector.broadcast %19 : vector<8x1xi32> to vector<8x128xi32>
    %37 = arith.cmpi eq, %30, %36 : vector<8x128xi32>
    %38 = vector.broadcast %29 : vector<8x1xi32> to vector<8x128xi32>
    %39 = arith.cmpi eq, %30, %38 : vector<8x128xi32>
    %40 = arith.ori %37, %39 : vector<8x128xi1>
    %cst_10 = arith.constant 1.000000e+00 : f32
    %cst_11 = arith.constant 0.000000e+00 : f32
    %41 = vector.broadcast %cst_10 : f32 to vector<8x128xf32>
    %42 = vector.broadcast %cst_11 : f32 to vector<8x128xf32>
    %43 = arith.select %40, %41, %42 : vector<8x128xi1>, vector<8x128xf32>
    %cst_12 = arith.constant 5.000000e-01 : f32
    %44 = vector.broadcast %cst_12 : f32 to vector<8x128xf32>
    %45 = arith.select %35, %44, %43 : vector<8x128xi1>, vector<8x128xf32>
    %c9_i32 = arith.constant 9 : i32
    %46 = vector.broadcast %c9_i32 : i32 to vector<8x128xi32>
    %47 = arith.cmpi sge, %30, %46 : vector<8x128xi32>
    %c53_i32 = arith.constant 53 : i32
    %48 = vector.broadcast %c53_i32 : i32 to vector<8x128xi32>
    %49 = arith.cmpi slt, %30, %48 : vector<8x128xi32>
    %50 = arith.andi %47, %49 : vector<8x128xi1>
    %c1_i32_13 = arith.constant 1 : i32
    %51 = vector.broadcast %c1_i32_13 : i32 to vector<8x1xi32>
    %52 = arith.subi %29, %51 : vector<8x1xi32>
    %53 = vector.broadcast %52 : vector<8x1xi32> to vector<8x128xi32>
    %54 = arith.cmpi ne, %30, %53 : vector<8x128xi32>
    %55 = arith.andi %50, %54 : vector<8x128xi1>
    %c1_i32_14 = arith.constant 1 : i32
    %56 = vector.broadcast %c1_i32_14 : i32 to vector<8x1xi32>
    %57 = arith.addi %29, %56 : vector<8x1xi32>
    %58 = vector.broadcast %57 : vector<8x1xi32> to vector<8x128xi32>
    %59 = arith.cmpi ne, %30, %58 : vector<8x128xi32>
    %60 = arith.andi %55, %59 : vector<8x128xi1>
    %cst_15 = arith.constant 1.000000e+00 : f32
    %61 = vector.broadcast %cst_15 : f32 to vector<8x128xf32>
    %62 = arith.subf %61, %45 : vector<8x128xf32>
    %cst_16 = arith.constant 0.000000e+00 : f32
    %63 = vector.broadcast %cst_16 : f32 to vector<8x128xf32>
    %64 = arith.select %60, %62, %63 : vector<8x128xi1>, vector<8x128xf32>
    %65 = arith.mulf %8, %45 : vector<8x128xf32>
    %cst_17 = arith.constant dense<0.000000e+00> : vector<8xf32>
    %66 = vector.multi_reduction <add>, %65, %cst_17 [1] : vector<8x128xf32> to vector<8xf32>
    %67 = vector.shape_cast %66 : vector<8xf32> to vector<8x1xf32>
    %68 = arith.mulf %8, %64 : vector<8x128xf32>
    %cst_18 = arith.constant dense<0.000000e+00> : vector<8xf32>
    %69 = vector.multi_reduction <add>, %68, %cst_18 [1] : vector<8x128xf32> to vector<8xf32>
    %70 = vector.shape_cast %69 : vector<8xf32> to vector<8x1xf32>
    %cst_19 = arith.constant 0.000000e+00 : f32
    %cst_20 = arith.constant 4.34294462 : f32
    %71 = arith.subf %cst_19, %cst_20 : f32
    %cst_21 = arith.constant 1.000000e+00 : f32
    %72 = vector.broadcast %cst_21 : f32 to vector<8x1xf32>
    %73 = arith.addf %70, %72 : vector<8x1xf32>
    %74 = arith.divf %67, %73 : vector<8x1xf32>
    %75 = math.log %74 : vector<8x1xf32>
    %76 = vector.broadcast %71 : f32 to vector<8x1xf32>
    %77 = arith.mulf %76, %75 : vector<8x1xf32>
    %c8_i32 = arith.constant 8 : i32
    %78 = arith.muli %arg0, %c8_i32 : i32
    %79 = tpu.iota {dimensions = array<i32: 0>} : vector<8x1xi32>
    %80 = vector.broadcast %78 : i32 to vector<8x1xi32>
    %81 = arith.addi %80, %79 : vector<8x1xi32>
    %c4_i32 = arith.constant 4 : i32
    %82 = vector.broadcast %c4_i32 : i32 to vector<8x1xi32>
    %83 = arith.cmpi slt, %81, %82 : vector<8x1xi32>
    %cst_22 = arith.constant 0.000000e+00 : f32
    %84 = vector.broadcast %cst_22 : f32 to vector<8x1xf32>
    %85 = arith.select %83, %77, %84 : vector<8x1xi1>, vector<8x1xf32>
    %cst_23 = arith.constant dense<0.000000e+00> : vector<1xf32>
    %86 = vector.multi_reduction <add>, %85, %cst_23 [0] : vector<8x1xf32> to vector<1xf32>
    %87 = vector.shape_cast %86 : vector<1xf32> to vector<1x1xf32>
    %88 = vector.shape_cast %87 : vector<1x1xf32> to vector<1x1x1xf32>
    %89 = vector.broadcast %88 : vector<1x1x1xf32> to vector<1x8x128xf32>
    %c0_24 = arith.constant 0 : index
    %c0_25 = arith.constant 0 : index
    %c0_26 = arith.constant 0 : index
    %90 = vector.load %arg4[%c0_24, %c0_25, %c0_26] : memref<1x8x128xf32, #tpu.memory_space<vmem>>, vector<1x8x128xf32>
    tpu.vector_store %arg4[%c0_24, %c0_25, %c0_26], %89 {strides = array<i32>} : memref<1x8x128xf32, #tpu.memory_space<vmem>>, vector<1x8x128xf32>,
    return
  }
  func.func @transform_0(%arg0: i32) -> (i32, i32) {
    %c0_i32 = arith.constant 0 : i32
    %c0_i32_0 = arith.constant 0 : i32
    return %arg0, %c0_i32 : i32, i32
  }
  func.func @transform_1(%arg0: i32) -> (i32, i32) {
    %c0_i32 = arith.constant 0 : i32
    %c0_i32_0 = arith.constant 0 : i32
    return %arg0, %c0_i32 : i32, i32
  }
  func.func @transform_2(%arg0: i32) -> (i32, i32) {
    %c0_i32 = arith.constant 0 : i32
    %c0_i32_0 = arith.constant 0 : i32
    %c0_i32_1 = arith.constant 0 : i32
    return %c0_i32, %c0_i32_0 : i32, i32
  }
  func.func @transform_3(%arg0: i32) -> (i32, i32, i32) {
    %c0_i32 = arith.constant 0 : i32
    %c0_i32_0 = arith.constant 0 : i32
    %c0_i32_1 = arith.constant 0 : i32
    return %arg0, %c0_i32, %c0_i32_0 : i32, i32, i32
  }
}

</mosaic_0001>

<bundles_post_ra>
// kernel: tpu_custom_call.1
= control target key start
LH: loop header
LB: loop body
LE: loop exit
PB: predicated region body
PF: predicated region fallthrough
CT: control target
= control target key end

     0   :  { %8 = vsyncpa [#allocation3], 0  ;;  %s702_s0 = inlined_call_operand.hbm [shape: f32[8,256], index: 0, kind: input, shape index: {}]   ;;  %s703_s1 = inlined_call_operand.vmem [shape: f32[8,1], index: 1, kind: input, shape index: {}]   ;;  %s704_s2 = inlined_call_operand.hbm [shape: bf16[256,256], index: 2, kind: input, shape index: {}]   ;;  %s705_s3 = inlined_call_operand.hbm [shape: f32[1,8,128], index: 3, kind: output, shape index: {}]  }
   0x1   :  { %9 = vsyncpa [#allocation6], 0 }
   0x2   :  { %10 = vsyncpa [#allocation4], 0  ;;  %s16_s14 = sshll.u32 %s702_s0, 4  ;;  %s663_s15 = smov [#allocation2]   ;;  %s17_s14 = int_to_ptr.hbm [resolvable:$true] %s16_s14 }
   0x3   :  { %s18_s16 = sshll.u32 %s663_s15, 4  ;;  %s28_s19 = sshll.u32 %s704_s2, 4  ;;  %s19_s16 = int_to_ptr.vmem [resolvable:$true] %s18_s16  ;;  %s29_s19 = int_to_ptr.hbm [resolvable:$true] %s28_s19 }
   0x4   :  { %21 = dma.hbm_to_vmem [thread:$0]  %s17_s14, 256, %s19_s16, [#allocation3]  }
   0x5   :  { %s664_s20 = smov [#allocation5]   ;;  %s665_s22 = smov 128  }
   0x6   :  { %s30_s21 = sshll.u32 %s664_s20, 4  ;;  %s666_s23 = smov 8   ;;  %s31_s21 = int_to_ptr.vmem [resolvable:$true] %s30_s21 }
   0x7   :  { %36 = dma.hbm_to_vmem [thread:$0]  %s29_s19, 4096, %s31_s21, [#allocation6], %s665_s22, %s665_s22, %s666_s23  }
   0x8   :  { %657 = dma.done.wait [#allocation3], 256  }
   0x9   :  { %658 = vsyncadd [#allocation3], 4294967040 }
   0xa   :  { %659 = dma.done.wait [#allocation6], 4096  }
   0xb   :  { %660 = vsyncadd [#allocation6], 4294963200  ;;  %v464_v0 = vld [vmem:[#allocation5 + $0x70] sm:$0xf]  ;;  %v552_v1 = vld [vmem:[#allocation5 + $0x74] sm:$0xf0] }
   0xc   :  { %v528_v2 = vld [vmem:[#allocation5 + $0xf0] sm:$0xf]  ;;  %v465_v3 = vor.u32 %v552_v1, %v464_v0  ;;  %v568_v4 = vld [vmem:[#allocation5 + $0xf4] sm:$0xf0]  ;;  %v551_v5 = vld [vmem:[#allocation5 + $0x74] sm:$0xf] }
   0xd   :  { %v466_v6 = vld [vmem:[#allocation5 + $0x78] sm:$0xf0]  ;;  %v529_v7 = vor.u32 %v568_v4, %v528_v2  ;;  %v567_v9 = vld [vmem:[#allocation5 + $0xf4] sm:$0xf]  ;;  %v456_v11 = vld [vmem:[#allocation5 + $0x60] sm:$0xf] }
   0xe   :  { %v469_v8 = vor.u32 %v551_v5, %v466_v6  ;;  %v530_v10 = vld [vmem:[#allocation5 + $0xf8] sm:$0xf0]  ;;  %241 = vmatpush.bf16.msra.mxu0 %v465_v3  ;;  %v550_v13 = vld [vmem:[#allocation5 + $0x64] sm:$0xf0]  ;;  %v520_v14 = vld [vmem:[#allocation5 + $0xe0] sm:$0xf] }
   0xf   :  { %v533_v12 = vor.u32 %v567_v9, %v530_v10  ;;  %v566_v15 = vld [vmem:[#allocation5 + $0xe4] sm:$0xf0]  ;;  %254 = vmatpush.bf16.msra.mxu1 %v529_v7  ;;  %v457_v16 = vor.u32 %v550_v13, %v456_v11  ;;  %v549_v18 = vld [vmem:[#allocation5 + $0x64] sm:$0xf]  ;;  %v458_v19 = vld [vmem:[#allocation5 + $0x68] sm:$0xf0] }
  0x10   :  { %267 = vmatpush.bf16.msra.mxu2 %v469_v8  ;;  %v521_v17 = vor.u32 %v566_v15, %v520_v14  ;;  %v565_v20 = vld [vmem:[#allocation5 + $0xe4] sm:$0xf]  ;;  %v461_v21 = vor.u32 %v549_v18, %v458_v19  ;;  %v522_v22 = vld [vmem:[#allocation5 + $0xe8] sm:$0xf0]  ;;  %v448_v23 = vld [vmem:[#allocation5 + $0x50] sm:$0xf] }
  0x11   :  { %280 = vmatpush.bf16.msra.mxu3 %v533_v12  ;;  %v548_v24 = vld [vmem:[#allocation5 + $0x54] sm:$0xf0]  ;;  %v525_v25 = vor.u32 %v565_v20, %v522_v22  ;;  %v512_v26 = vld [vmem:[#allocation5 + $0xd0] sm:$0xf]  ;;  %v547_v28 = vld [vmem:[#allocation5 + $0x54] sm:$0xf] }
  0x12   :  { %v564_v27 = vld [vmem:[#allocation5 + $0xd4] sm:$0xf0]  ;;  %242 = vmatpush.bf16.msra.mxu0 %v457_v16  ;;  %v449_v29 = vor.u32 %v548_v24, %v448_v23  ;;  %v450_v30 = vld [vmem:[#allocation5 + $0x58] sm:$0xf0]  ;;  %v563_v31 = vld [vmem:[#allocation5 + $0xd4] sm:$0xf] }
  0x13   :  { %v514_v32 = vld [vmem:[#allocation5 + $0xd8] sm:$0xf0]  ;;  %255 = vmatpush.bf16.msra.mxu1 %v521_v17  ;;  %v513_v33 = vor.u32 %v564_v27, %v512_v26  ;;  %v453_v34 = vor.u32 %v547_v28, %v450_v30  ;;  %v440_v35 = vld [vmem:[#allocation5 + $0x40] sm:$0xf]  ;;  %v546_v36 = vld [vmem:[#allocation5 + $0x44] sm:$0xf0] }
  0x14   :  { %268 = vmatpush.bf16.msra.mxu2 %v461_v21  ;;  %v504_v37 = vld [vmem:[#allocation5 + $0xc0] sm:$0xf]  ;;  %v517_v38 = vor.u32 %v563_v31, %v514_v32  ;;  %v562_v39 = vld [vmem:[#allocation5 + $0xc4] sm:$0xf0]  ;;  %v545_v40 = vld [vmem:[#allocation5 + $0x44] sm:$0xf]  ;;  %v441_v44 = vor.u32 %v546_v36, %v440_v35 }
  0x15   :  { %281 = vmatpush.bf16.msra.mxu3 %v525_v25  ;;  %v442_v41 = vld [vmem:[#allocation5 + $0x48] sm:$0xf0]  ;;  %v561_v42 = vld [vmem:[#allocation5 + $0xc4] sm:$0xf]  ;;  %v505_v45 = vor.u32 %v562_v39, %v504_v37  ;;  %v432_v47 = vld [vmem:[#allocation5 + $0x30] sm:$0xf] }
  0x16   :  { %v506_v43 = vld [vmem:[#allocation5 + $0xc8] sm:$0xf0]  ;;  %243 = vmatpush.bf16.msra.mxu0 %v449_v29  ;;  %v445_v46 = vor.u32 %v545_v40, %v442_v41  ;;  %v544_v48 = vld [vmem:[#allocation5 + $0x34] sm:$0xf0]  ;;  %v496_v49 = vld [vmem:[#allocation5 + $0xb0] sm:$0xf] }
  0x17   :  { %256 = vmatpush.bf16.msra.mxu1 %v513_v33  ;;  %v509_v50 = vor.u32 %v561_v42, %v506_v43  ;;  %v560_v51 = vld [vmem:[#allocation5 + $0xb4] sm:$0xf0]  ;;  %v543_v52 = vld [vmem:[#allocation5 + $0x34] sm:$0xf]  ;;  %v434_v53 = vld [vmem:[#allocation5 + $0x38] sm:$0xf0]  ;;  %v433_v56 = vor.u32 %v544_v48, %v432_v47 }
  0x18   :  { %269 = vmatpush.bf16.msra.mxu2 %v453_v34  ;;  %v559_v54 = vld [vmem:[#allocation5 + $0xb4] sm:$0xf]  ;;  %v498_v55 = vld [vmem:[#allocation5 + $0xb8] sm:$0xf0]  ;;  %v497_v57 = vor.u32 %v560_v51, %v496_v49  ;;  %v437_v58 = vor.u32 %v543_v52, %v434_v53  ;;  %v424_v59 = vld [vmem:[#allocation5 + $0x20] sm:$0xf]  ;;  %v310_v51 = vlaneseq }
  0x19   :  { %282 = vmatpush.bf16.msra.mxu3 %v517_v38  ;;  %v542_v60 = vld [vmem:[#allocation5 + $0x24] sm:$0xf0]  ;;  %v488_v61 = vld [vmem:[#allocation5 + $0xa0] sm:$0xf]  ;;  %v501_v62 = vor.u32 %v559_v54, %v498_v55  ;;  %v541_v0 = vld [vmem:[#allocation5 + $0x24] sm:$0xf] }
  0x1a   :  { %244 = vmatpush.bf16.msra.mxu0 %v441_v44  ;;  %v558_v63 = vld [vmem:[#allocation5 + $0xa4] sm:$0xf0]  ;;  %v426_v1 = vld [vmem:[#allocation5 + $0x28] sm:$0xf0]  ;;  %v557_v2 = vld [vmem:[#allocation5 + $0xa4] sm:$0xf]  ;;  %v425_v4 = vor.u32 %v542_v60, %v424_v59 }
  0x1b   :  { %257 = vmatpush.bf16.msra.mxu1 %v505_v45  ;;  %v490_v3 = vld [vmem:[#allocation5 + $0xa8] sm:$0xf0]  ;;  %v416_v5 = vld [vmem:[#allocation5 + $0x10] sm:$0xf]  ;;  %v489_v6 = vor.u32 %v558_v63, %v488_v61  ;;  %v429_v7 = vor.u32 %v541_v0, %v426_v1  ;;  %v540_v8 = vld [vmem:[#allocation5 + $0x14] sm:$0xf0] }
  0x1c   :  { %270 = vmatpush.bf16.msra.mxu2 %v445_v46  ;;  %v480_v9 = vld [vmem:[#allocation5 + $0x90] sm:$0xf]  ;;  %v556_v10 = vld [vmem:[#allocation5 + $0x94] sm:$0xf0]  ;;  %v493_v11 = vor.u32 %v557_v2, %v490_v3  ;;  %v539_v12 = vld [vmem:[#allocation5 + $0x14] sm:$0xf]  ;;  %v417_v19 = vor.u32 %v540_v8, %v416_v5 }
  0x1d   :  { %283 = vmatpush.bf16.msra.mxu3 %v509_v50  ;;  %v418_v13 = vld [vmem:[#allocation5 + $0x18] sm:$0xf0]  ;;  %v296_v14 = vld [vmem:[%s703_s1] sm:$0xff]  ;;  %v667_v17 = vmov 0   ;;  %v408_v20 = vld [vmem:[#allocation5] sm:$0xf]  ;;  %v481_v21 = vor.u32 %v556_v10, %v480_v9 }
  0x1e   :  { %245 = vmatpush.bf16.msra.mxu0 %v433_v56  ;;  %v555_v15 = vld [vmem:[#allocation5 + $0x94] sm:$0xf]  ;;  %v482_v16 = vld [vmem:[#allocation5 + $0x98] sm:$0xf0]  ;;  %578 = vset.pattern.permute.xlu0 %v667_v17  ;;  %v297_v18 = vmul.f32 12.8, %v296_v14  ;;  %v421_v22 = vor.u32 %v539_v12, %v418_v13 }
  0x1f   :  { %258 = vmatpush.bf16.msra.mxu1 %v497_v57  ;;  %579 = vset.pattern.permute.xlu1 %v667_v17  ;;  %v538_v23 = vld [vmem:[#allocation5 + $0x4] sm:$0xf0]  ;;  %v472_v24 = vld [vmem:[#allocation5 + $0x80] sm:$0xf]  ;;  %v485_v26 = vor.u32 %v555_v15, %v482_v16  ;;  %v537_v28 = vld [vmem:[#allocation5 + $0x4] sm:$0xf] }
  0x20   :  { %271 = vmatpush.bf16.msra.mxu2 %v437_v58  ;;  %580 = vset.pattern.permute.xlu2 %v667_v17  ;;  %v534_v25 = vadd.f32 -0.5, %v297_v18  ;;  %v554_v27 = vld [vmem:[#allocation5 + $0x84] sm:$0xf0]  ;;  %v410_v29 = vld [vmem:[#allocation5 + $0x8] sm:$0xf0]  ;;  %v409_v33 = vor.u32 %v538_v23, %v408_v20  ;;  %v45_v34 = vld [vmem:[#allocation2] sm:$0xff] }
  0x21   :  { %284 = vmatpush.bf16.msra.mxu3 %v501_v62  ;;  %v553_v30 = vld [vmem:[#allocation5 + $0x84] sm:$0xf]  ;;  %v474_v31 = vld [vmem:[#allocation5 + $0x88] sm:$0xf0]  ;;  %v473_v35 = vor.u32 %v554_v27, %v472_v24  ;;  %v413_v36 = vor.u32 %v537_v28, %v410_v29  ;;  %v46_v38 = vld [vmem:[#allocation2 + $0x8] sm:$0xff]  ;;  %v47_v40 = vpack.c.bf16 %v45_v34, %v45_v34  ;;  %v311_v53 = vand.u32 127, %v310_v51 }
  0x22   :  { %246 = vmatpush.bf16.msra.mxu0 %v425_v4  ;;  %v299_v32 = vceil.f32 %v534_v25  ;;  %v477_v39 = vor.u32 %v553_v30, %v474_v31  ;;  %v48_v42 = vpack.c.bf16 %v46_v38, %v46_v38  ;;  %v668_v59 = vmov 0.0   ;;  %s669_s1 = smov [#allocation7]   ;;  %s395_s27 = sshll.u32 %s705_s3, 4  ;;  %s396_s27 = int_to_ptr.hbm [resolvable:$true] %s395_s27 }
  0x23   :  { %259 = vmatpush.bf16.msra.mxu1 %v489_v6  ;;  %vm332_vm8 = vcmp.ge.s32.totalorder %v311_v53, 9  ;;  %vm333_vm9 = vcmp.lt.s32.totalorder %v311_v53, 53  ;;  %v376_v28 = vshrl.u32 %v310_v51, 7  ;;  %s393_s24 = sshll.u32 %s669_s1, 4  ;;  %s394_s24 = int_to_ptr.vmem [resolvable:$true] %s393_s24 }
  0x24   :  { %272 = vmatpush.bf16.msra.mxu2 %v429_v7  ;;  %v570_v37 = vcvt.f32.s32 %v299_v32  ;;  %vm334_vm11 = vmand %vm332_vm8, %vm333_vm9 }
  0x25   :  { %285 = vmatpush.bf16.msra.mxu3 %v493_v11 }
  0x26   :  { %247 = vmatpush.bf16.msra.mxu0 %v417_v19  ;;  %vm301_vm0 = vcmp.gt.s32.totalorder %v570_v37, 0 }
  0x27   :  { %260 = vmatpush.bf16.msra.mxu1 %v481_v21  ;;  %v302_v41 = vsel %vm301_vm0, %v570_v37, 0 }
  0x28   :  { %273 = vmatpush.bf16.msra.mxu2 %v421_v22  ;;  %vm303_vm1 = vcmp.lt.s32.totalorder %v302_v41, 128 }
  0x29   :  { %286 = vmatpush.bf16.msra.mxu3 %v485_v26  ;;  %v304_v43 = vsel %vm303_vm1, %v302_v41, 128 }
  0x2a   :  { %248 = vmatpush.bf16.msra.mxu0 %v409_v33  ;;  %322 = vperm.xlu0 %578, %v304_v43   ;;  %vm305_vm2 = vcmp.gt.s32.totalorder %v304_v43, 0  ;;  %v535_v44 = vadd.s32 4294967295, %v304_v43  ;;  %v309_v45 = vmul.u32 2, %v304_v43  ;;  %v308_v48 = vadd.s32 1, %v304_v43 }
  0x2b   :  { %261 = vmatpush.bf16.msra.mxu1 %v473_v35 }
  0x2c   :  { %274 = vmatpush.bf16.msra.mxu2 %v413_v36  ;;  %v307_v46 = vsel %vm305_vm2, %v535_v44, 128  ;;  %v536_v47 = vadd.s32 4294967295, %v309_v45  ;;  %v341_v49 = vadd.s32 1, %v309_v45 }
  0x2d   :  { %287 = vmatpush.bf16.msra.mxu3 %v477_v39  ;;  %249 = vmatmul.bf16.vlgmr.msra.gmra.mxu0 %v47_v40 }
  0x2e   :  { %262 = vmatmul.bf16.vlgmr.msra.gmra.mxu1 %v48_v42  ;;  %313 = vperm.xlu1 %579, %v307_v46  }
  0x2f   :  { %275 = vmatmul.bf16.vlgmr.msra.gmra.mxu2 %v47_v40  ;;  %337 = vperm.xlu2 %580, %v536_v47  }
  0x30   :  { %288 = vmatmul.bf16.vlgmr.msra.gmra.mxu3 %v48_v42 }
  0x32   :  { %326 = vperm.xlu0 %578, %v309_v45  }
  0x36   :  { %317 = vperm.xlu1 %579, %v308_v48  }
  0x37   :  { %343 = vperm.xlu2 %580, %v341_v49  }
  0x89   :  { %v338_v54 = vpop.permute.xlu2 %337 }
  0x8a   :  { %vm339_vm12 = vcmp.ne.s32.totalorder %v311_v53, %v338_v54 }
  0x8b   :  { %vm340_vm13 = vmand %vm334_vm11, %vm339_vm12 }
  0x91   :  { %v344_v62 = vpop.permute.xlu2 %343 }
  0x92   :  { %vm345_vm14 = vcmp.ne.s32.totalorder %v311_v53, %v344_v62 }
  0x93   :  { %vm346_vm15 = vmand %vm340_vm13, %vm345_vm14 }
  0x9c   :  { %v323_v50 = vpop.permute.xlu0 %322 }
  0x9d   :  { %vm324_vm3 = vcmp.eq.s32.totalorder %v311_v53, %v323_v50 }
  0xa0   :  { %v314_v52 = vpop.permute.xlu1 %313 }
  0xa1   :  { %vm315_vm5 = vcmp.eq.s32.totalorder %v311_v53, %v314_v52 }
  0xa4   :  { %v327_v55 = vpop.permute.xlu0 %326 }
  0xa5   :  { %vm328_vm4 = vcmp.eq.s32.totalorder %v311_v53, %v327_v55 }
  0xa6   :  { %vm329_vm6 = vmor %vm324_vm3, %vm328_vm4  ;;  %vm379_vm4 = vcmp.lt.s32.totalorder %v376_v28, 4 }
  0xa7   :  { %v330_v60 = vsel %vm329_vm6, 1.0, %v668_v59 }
  0xa8   :  { %v318_v56 = vpop.permute.xlu1 %317 }
  0xa9   :  { %vm319_vm7 = vcmp.eq.s32.totalorder %v311_v53, %v318_v56 }
  0xaa   :  { %v250_v57 = vpop.f32.mrf.mxu0  ;;  %vm320_vm10 = vmor %vm315_vm5, %vm319_vm7 }
  0xab   :  { %v263_v58 = vpop.f32.mrf.mxu1  ;;  %v331_v63 = vsel %vm320_vm10, 0.5, %v330_v60 }
  0xac   :  { %v264_v61 = vadd.f32 %v263_v58, %v250_v57  ;;  %v347_v6 = vsub.f32 1.0, %v331_v63 }
  0xae   :  { %v293_v3 = vmul.f32 %v264_v61, %v264_v61  ;;  %v348_v9 = vsel %vm346_vm15, %v347_v6, 0.0 }
  0xb2   :  { %v276_v0 = vpop.f32.mrf.mxu2  ;;  %v252_v2 = vpop.f32.mrf.mxu0 }
  0xb3   :  { %v289_v1 = vpop.f32.mrf.mxu3  ;;  %v265_v5 = vpop.f32.mrf.mxu1 }
  0xb4   :  { %v290_v4 = vadd.f32 %v289_v1, %v276_v0 }
  0xb6   :  { %v294_v7 = vmul.f32 %v290_v4, %v290_v4 }
  0xb8   :  { %v295_v8 = vadd.f32 %v294_v7, %v293_v3 }
  0xba   :  { %v278_v10 = vpop.f32.mrf.mxu2  ;;  %v352_v11 = vmul.f32 %v348_v9, %v295_v8  ;;  %v349_v12 = vmul.f32 %v331_v63, %v295_v8 }
  0xbb   :  { %v291_v13 = vpop.f32.mrf.mxu3 }
  0xbc   :  { %353 = vadd.xlane.f32.xlu0 %v352_v11  ;;  %350 = vadd.xlane.f32.xlu1 %v349_v12 }
 0x12f   :  { %v354_v14 = vpop.xlane.xlu0 %353  ;;  %v351_v26 = vpop.xlane.xlu1 %350 }
 0x130   :  { %v355_v15 = vadd.f32 1.0, %v354_v14 }
 0x132   :  { %581 = vrcp.f32 %v355_v15  ;;  %v367_v19 = vand.u32 2147483648, %v355_v15  ;;  %v365_v21 = vand.u32 2147483647, %v355_v15  ;;  %vm361_vm1 = vweird.f32 %v355_v15 }
 0x134   :  { %v368_v23 = vor.u32 1.1754944e-38, %v367_v19  ;;  %vm366_vm3 = vcmp.eq.f32.partialorder %v365_v21, 8.507059e+37 }
 0x138   :  { %v582_v16 = vpop.eup %581 }
 0x139   :  { %v357_v17 = vmul.f32 %v582_v16, %v355_v15  ;;  %vm362_vm0 = vweird.f32 %v582_v16 }
 0x13a   :  { %vm363_vm2 = vmor %vm361_vm1, %vm362_vm0 }
 0x13b   :  { %v358_v18 = vsub.f32 1.0, %v357_v17 }
 0x13d   :  { %v359_v20 = vmul.f32 %v582_v16, %v358_v18 }
 0x13f   :  { %v360_v22 = vadd.f32 %v582_v16, %v359_v20 }
 0x141   :  { %v364_v24 = vsel %vm363_vm2, %v582_v16, %v360_v22 }
 0x142   :  { %v369_v25 = vsel %vm366_vm3, %v368_v23, %v364_v24 }
 0x143   :  { %v370_v27 = vmul.f32 %v369_v25, %v351_v26 }
 0x145   :  { %583 = vlog2.f32 %v370_v27 }
 0x14b   :  { %v584_v29 = vpop.eup %583 }
 0x14c   :  { %v372_v30 = vmul.f32 0.6931472, %v584_v29 }
 0x14e   :  { %v373_v31 = vmul.f32 -4.3429446, %v372_v30 }
 0x150   :  { %v380_v32 = vsel %vm379_vm4, %v373_v31, 0.0 }
 0x151   :  { %v381_v33 = vrot.slane %v380_v32, 4 }
 0x153   :  { %v382_v34 = vadd.f32 %v381_v33, %v380_v32 }
 0x155   :  { %v383_v35 = vrot.slane %v382_v34, 2 }
 0x157   :  { %v384_v36 = vadd.f32 %v383_v35, %v382_v34 }
 0x159   :  { %v385_v37 = vrot.slane %v384_v36, 1 }
 0x15b   :  { %v386_v38 = vadd.f32 %v385_v37, %v384_v36 }
 0x15d   :  { %387 = vst [vmem:[#allocation7] sm:$0xff] %v386_v38 }
 0x15e   :  { %398 = dma.vmem_to_hbm [thread:$0]  %s394_s24, 128, %s396_s27, [#allocation4]  }
 0x15f   :  { %661 = dma.done.wait [#allocation4], 128  }
 0x160   :  { %662 = vsyncadd [#allocation4], 4294967168 }
 0x161   :  { %403 = vsyncpa [#allocation3], 1 }
 0x162   :  { %404 = vsyncpa [#allocation6], 1 }
 0x163   :  { %405 = vsyncpa [#allocation4], 1 }

</bundles_post_ra>
